<compile_context>
chip_gen: v7x
topology: tpu7x:2x2x1
jax: 0.10.0
libtpu: 0.0.40
codegen_flags: <defaults>
</compile_context>

<pallas_src>
import jax
import jax.numpy as jnp
from jax.experimental import pallas as pl
from jax.experimental.pallas import tpu as pltpu


# --------------------------------------------------------------------------
# Kernel
# --------------------------------------------------------------------------
def _mlp_kernel(x_ref, w1_ref, b1_ref, w2_ref, b2_ref, w3_ref, b3_ref, o_ref):
    # fc1 + ReLU (bf16 MXU operands, f32 accumulation; elementwise in f32)
    x = x_ref[...]                                           # already bf16
    h1 = jnp.dot(x, w1_ref[...], preferred_element_type=jnp.float32)
    h1 = jnp.maximum(h1 + b1_ref[...], 0.0)
    # fc2 + ReLU
    h2 = jnp.dot(h1.astype(jnp.bfloat16), w2_ref[...],
                 preferred_element_type=jnp.float32)
    h2 = jnp.maximum(h2 + b2_ref[...], 0.0)
    # fc3 (no activation)
    out = jnp.dot(h2.astype(jnp.bfloat16), w3_ref[...],
                  preferred_element_type=jnp.float32)
    o_ref[...] = (out + b3_ref[...]).astype(o_ref.dtype)


# --------------------------------------------------------------------------
# Wrapper
# --------------------------------------------------------------------------
def _round_up(n, m):
    return ((n + m - 1) // m) * m


def pack_params(params):
    """One-time conversion: bf16 weights for the MXU, f32 biases (VPU path)."""
    w1, b1, w2, b2, w3, b3 = params
    return (w1.astype(jnp.bfloat16), b1.astype(jnp.float32),
            w2.astype(jnp.bfloat16), b2.astype(jnp.float32),
            w3.astype(jnp.bfloat16), b3.astype(jnp.float32))


def fc2layer_forward(x, packed_params, *, batch_tile=8192):
    """x: any shape whose trailing product reshapes to (-1, input_size).

    packed_params: output of pack_params() (bf16 weights, f32 biases)."""
    w1, b1, w2, b2, w3, b3 = packed_params
    input_size = w1.shape[0]
    h1_size, h2_size = w1.shape[1], w2.shape[1]
    output_size = w3.shape[1]

    # torch .view(-1, input_size) glue + bf16 stream-in.  Under jit this
    # reshape/astype/pad fuses into one producer pass over x.
    x2d = x.reshape(-1, input_size).astype(jnp.bfloat16)
    B = x2d.shape[0]

    # ---- per-generation VMEM budget ---------------------------------------
    try:
        vmem_cap = int(pltpu.get_tpu_info().vmem_capacity_bytes)
    except Exception:
        vmem_cap = 64 * 1024 * 1024            # conservative (v7x floor)
    # 3/4 of physical, hard-capped at ~100 MiB:
    #   v5e/v6e (128 MiB) -> 96 MiB budget; v7x (64 MiB) -> 48 MiB budget.
    budget = min((vmem_cap * 3) // 4, 100 * 1024 * 1024)

    # ---- honest (128-lane-padded) footprint --------------------------------
    lanes = lambda n: _round_up(n, 128)
    sub = lambda n: _round_up(n, 8)
    # Per batch-row bytes inside the kernel (double-buffered tiles + temps):
    per_row = (2 * lanes(input_size) * 2          # x tile, 2 bufs, bf16
               + 2 * lanes(output_size) * 4       # out tile, 2 bufs, f32
               + lanes(h1_size) * (4 + 2)         # h1 f32 + bf16 recast
               + lanes(h2_size) * (4 + 2))        # h2 f32 + bf16 recast
    # Resident weights/biases (count double-buffered to be safe):
    weight_bytes = 2 * (sub(input_size) * lanes(h1_size) * 2
                        + sub(h1_size) * lanes(h2_size) * 2
                        + sub(h2_size) * lanes(output_size) * 2
                        + 8 * lanes(h1_size) * 4
                        + 8 * lanes(h2_size) * 4
                        + 8 * lanes(output_size) * 4)

    # ---- batch tile selection ----------------------------------------------
    B16 = _round_up(max(B, 1), 16)                # bf16 sublane tile is 16
    tb_vmem = max(16, ((budget - weight_bytes) // per_row) // 16 * 16)
    TB = min(_round_up(batch_tile, 16), tb_vmem, B16)
    # Keep >= ~8 grid steps when the batch is big enough (v7x: 2 TCs x >=4
    # steps each; also preserves pipelining depth).  Harmless on v5e/v6e.
    MIN_STEPS = 8
    if B16 >= MIN_STEPS * 16 and B16 // TB < MIN_STEPS:
        TB = max(16, _round_up(-(-B16 // MIN_STEPS), 16))

    B_pad = _round_up(B, TB)
    if B_pad != B:
        x2d = jnp.pad(x2d, ((0, B_pad - B), (0, 0)))
    grid = (B_pad // TB,)

    need = TB * per_row + weight_bytes
    vmem_limit = int(min(budget, max(16 * 1024 * 1024, 2 * need)))

    flops = 2 * B_pad * (input_size * h1_size + h1_size * h2_size
                         + h2_size * output_size)
    bytes_accessed = (B_pad * input_size * 2                 # bf16 x
                      + B_pad * output_size * 4              # f32 out
                      + (w1.size + w2.size + w3.size) * 2
                      + (b1.size + b2.size + b3.size) * 4)

    resident = lambda a: pl.BlockSpec(a.shape, lambda i: (0, 0))

    out = pl.pallas_call(
        _mlp_kernel,
        out_shape=jax.ShapeDtypeStruct((B_pad, output_size), jnp.float32),
        grid=grid,
        in_specs=[pl.BlockSpec((TB, input_size), lambda i: (i, 0)),
                  resident(w1), resident(b1),
                  resident(w2), resident(b2),
                  resident(w3), resident(b3)],
        out_specs=pl.BlockSpec((TB, output_size), lambda i: (i, 0)),
        compiler_params=pltpu.CompilerParams(
            dimension_semantics=("parallel",),
            vmem_limit_bytes=vmem_limit),
        cost_estimate=pl.CostEstimate(flops=flops, transcendentals=0,
                                      bytes_accessed=bytes_accessed),
    )(x2d, w1, b1, w2, b2, w3, b3)

    return out[:B] if B_pad != B else out


def init_params(key, input_size, output_size, inter1=32, inter2=16):
    """Deterministic init mimicking nn.Linear's uniform(-1/sqrt(fan_in), ...)."""
    ks = jax.random.split(key, 6)

    def linear(kw, kb, fan_in, fan_out):
        bound = 1.0 / jnp.sqrt(fan_in)
        w = jax.random.uniform(kw, (fan_in, fan_out), jnp.float32, -bound, bound)
        b = jax.random.uniform(kb, (1, fan_out), jnp.float32, -bound, bound)
        return w, b

    w1, b1 = linear(ks[0], ks[1], input_size, inter1)
    w2, b2 = linear(ks[2], ks[3], inter1, inter2)
    w3, b3 = linear(ks[4], ks[5], inter2, output_size)
    return (w1, b1, w2, b2, w3, b3)


if __name__ == "__main__":
    INPUT_SIZE = 64       # a (2, 4, 4, 4) input flattened to 64 features
    OUTPUT_SIZE = 10
    key = jax.random.PRNGKey(0)
    k_param, k_x = jax.random.split(key)

    params = init_params(k_param, INPUT_SIZE, OUTPUT_SIZE)
    packed = pack_params(params)                     # one-time bf16 weight pack
    x = jax.random.normal(k_x, (2, 4, 4, 4), jnp.float32)   # batch=2, C=4, 4x4

    fwd = jax.jit(lambda xx: fc2layer_forward(xx, packed))
    y = fwd(x)
    jax.block_until_ready(y)

    # Pure-JAX f32 reference.  Kernel uses bf16 MXU operands (f32 accumulate),
    # so compare with a bf16-appropriate tolerance.
    w1, b1, w2, b2, w3, b3 = params
    x2d = x.reshape(-1, INPUT_SIZE)
    ref = jnp.maximum(x2d @ w1 + b1, 0.0)
    ref = jnp.maximum(ref @ w2 + b2, 0.0)
    ref = ref @ w3 + b3

    assert y.shape == (2, OUTPUT_SIZE)
    assert jnp.allclose(y, ref, atol=5e-2, rtol=5e-2)

    print("KERNEL_OK")
</pallas_src>

<mosaic_0001>
module attributes {stable_mosaic.version = 11 : i64} {
  func.func @_mlp_kernel(%arg0: i32, %arg1: memref<16x64xbf16, #tpu.memory_space<vmem>>, %arg2: memref<64x32xbf16, #tpu.memory_space<vmem>>, %arg3: memref<1x32xf32, #tpu.memory_space<vmem>>, %arg4: memref<32x16xbf16, #tpu.memory_space<vmem>>, %arg5: memref<1x16xf32, #tpu.memory_space<vmem>>, %arg6: memref<16x10xbf16, #tpu.memory_space<vmem>>, %arg7: memref<1x10xf32, #tpu.memory_space<vmem>>, %arg8: memref<16x10xf32, #tpu.memory_space<vmem>>) attributes {dimension_semantics = [#tpu.dimension_semantics<parallel>], iteration_bounds = array<i64: 1>, scalar_prefetch = 0 : i64, scratch_operands = 0 : i64, tpu.core_type = #tpu.core_type<tc>, window_params = [{transform_indices = @transform_0, window_bounds = array<i64: 16, 64>}, {pipeline_mode = #tpu.pipeline_mode<synchronous>, transform_indices = @transform_1, window_bounds = array<i64: 64, 32>}, {pipeline_mode = #tpu.pipeline_mode<synchronous>, transform_indices = @transform_2, window_bounds = array<i64: 1, 32>}, {pipeline_mode = #tpu.pipeline_mode<synchronous>, transform_indices = @transform_3, window_bounds = array<i64: 32, 16>}, {pipeline_mode = #tpu.pipeline_mode<synchronous>, transform_indices = @transform_4, window_bounds = array<i64: 1, 16>}, {pipeline_mode = #tpu.pipeline_mode<synchronous>, transform_indices = @transform_5, window_bounds = array<i64: 16, 10>}, {pipeline_mode = #tpu.pipeline_mode<synchronous>, transform_indices = @transform_6, window_bounds = array<i64: 1, 10>}, {transform_indices = @transform_7, window_bounds = array<i64: 16, 10>}]} {
    %c0 = arith.constant 0 : index
    %c0_0 = arith.constant 0 : index
    %0 = vector.load %arg1[%c0, %c0_0] : memref<16x64xbf16, #tpu.memory_space<vmem>>, vector<16x64xbf16>
    %c0_1 = arith.constant 0 : index
    %c0_2 = arith.constant 0 : index
    %1 = vector.load %arg2[%c0_1, %c0_2] : memref<64x32xbf16, #tpu.memory_space<vmem>>, vector<64x32xbf16>
    %cst = arith.constant dense<0.000000e+00> : vector<16x32xf32>
    %2 = tpu.matmul %0, %1, %cst {dimension_numbers = #tpu.dot_dimension_numbers<[1], [0], [0], [1], [0, 0, 1, 1], [], []>} : vector<16x64xbf16>, vector<64x32xbf16>, vector<16x32xf32> -> vector<16x32xf32>
    %c0_3 = arith.constant 0 : index
    %c0_4 = arith.constant 0 : index
    %3 = vector.load %arg3[%c0_3, %c0_4] : memref<1x32xf32, #tpu.memory_space<vmem>>, vector<1x32xf32>
    %4 = vector.broadcast %3 : vector<1x32xf32> to vector<16x32xf32>
    %5 = arith.addf %2, %4 : vector<16x32xf32>
    %cst_5 = arith.constant 0.000000e+00 : f32
    %6 = vector.broadcast %cst_5 : f32 to vector<16x32xf32>
    %7 = arith.maximumf %5, %6 : vector<16x32xf32>
    %8 = arith.truncf %7 : vector<16x32xf32> to vector<16x32xbf16>
    %c0_6 = arith.constant 0 : index
    %c0_7 = arith.constant 0 : index
    %9 = vector.load %arg4[%c0_6, %c0_7] : memref<32x16xbf16, #tpu.memory_space<vmem>>, vector<32x16xbf16>
    %cst_8 = arith.constant dense<0.000000e+00> : vector<16x16xf32>
    %10 = tpu.matmul %8, %9, %cst_8 {dimension_numbers = #tpu.dot_dimension_numbers<[1], [0], [0], [1], [0, 0, 1, 1], [], []>} : vector<16x32xbf16>, vector<32x16xbf16>, vector<16x16xf32> -> vector<16x16xf32>
    %c0_9 = arith.constant 0 : index
    %c0_10 = arith.constant 0 : index
    %11 = vector.load %arg5[%c0_9, %c0_10] : memref<1x16xf32, #tpu.memory_space<vmem>>, vector<1x16xf32>
    %12 = vector.broadcast %11 : vector<1x16xf32> to vector<16x16xf32>
    %13 = arith.addf %10, %12 : vector<16x16xf32>
    %cst_11 = arith.constant 0.000000e+00 : f32
    %14 = vector.broadcast %cst_11 : f32 to vector<16x16xf32>
    %15 = arith.maximumf %13, %14 : vector<16x16xf32>
    %16 = arith.truncf %15 : vector<16x16xf32> to vector<16x16xbf16>
    %c0_12 = arith.constant 0 : index
    %c0_13 = arith.constant 0 : index
    %17 = vector.load %arg6[%c0_12, %c0_13] : memref<16x10xbf16, #tpu.memory_space<vmem>>, vector<16x10xbf16>
    %cst_14 = arith.constant dense<0.000000e+00> : vector<16x10xf32>
    %18 = tpu.matmul %16, %17, %cst_14 {dimension_numbers = #tpu.dot_dimension_numbers<[1], [0], [0], [1], [0, 0, 1, 1], [], []>} : vector<16x16xbf16>, vector<16x10xbf16>, vector<16x10xf32> -> vector<16x10xf32>
    %c0_15 = arith.constant 0 : index
    %c0_16 = arith.constant 0 : index
    %19 = vector.load %arg7[%c0_15, %c0_16] : memref<1x10xf32, #tpu.memory_space<vmem>>, vector<1x10xf32>
    %20 = vector.broadcast %19 : vector<1x10xf32> to vector<16x10xf32>
    %21 = arith.addf %18, %20 : vector<16x10xf32>
    %c0_17 = arith.constant 0 : index
    %c0_18 = arith.constant 0 : index
    %22 = vector.load %arg8[%c0_17, %c0_18] : memref<16x10xf32, #tpu.memory_space<vmem>>, vector<16x10xf32>
    tpu.vector_store %arg8[%c0_17, %c0_18], %21 {strides = array<i32>} : memref<16x10xf32, #tpu.memory_space<vmem>>, vector<16x10xf32>,
    return
  }
  func.func @transform_0(%arg0: i32) -> (i32, i32) {
    %c0_i32 = arith.constant 0 : i32
    %c0_i32_0 = arith.constant 0 : i32
    return %arg0, %c0_i32 : i32, i32
  }
  func.func @transform_1(%arg0: i32) -> (i32, i32) {
    %c0_i32 = arith.constant 0 : i32
    %c0_i32_0 = arith.constant 0 : i32
    %c0_i32_1 = arith.constant 0 : i32
    return %c0_i32, %c0_i32_0 : i32, i32
  }
  func.func @transform_2(%arg0: i32) -> (i32, i32) {
    %c0_i32 = arith.constant 0 : i32
    %c0_i32_0 = arith.constant 0 : i32
    %c0_i32_1 = arith.constant 0 : i32
    return %c0_i32, %c0_i32_0 : i32, i32
  }
  func.func @transform_3(%arg0: i32) -> (i32, i32) {
    %c0_i32 = arith.constant 0 : i32
    %c0_i32_0 = arith.constant 0 : i32
    %c0_i32_1 = arith.constant 0 : i32
    return %c0_i32, %c0_i32_0 : i32, i32
  }
  func.func @transform_4(%arg0: i32) -> (i32, i32) {
    %c0_i32 = arith.constant 0 : i32
    %c0_i32_0 = arith.constant 0 : i32
    %c0_i32_1 = arith.constant 0 : i32
    return %c0_i32, %c0_i32_0 : i32, i32
  }
  func.func @transform_5(%arg0: i32) -> (i32, i32) {
    %c0_i32 = arith.constant 0 : i32
    %c0_i32_0 = arith.constant 0 : i32
    %c0_i32_1 = arith.constant 0 : i32
    return %c0_i32, %c0_i32_0 : i32, i32
  }
  func.func @transform_6(%arg0: i32) -> (i32, i32) {
    %c0_i32 = arith.constant 0 : i32
    %c0_i32_0 = arith.constant 0 : i32
    %c0_i32_1 = arith.constant 0 : i32
    return %c0_i32, %c0_i32_0 : i32, i32
  }
  func.func @transform_7(%arg0: i32) -> (i32, i32) {
    %c0_i32 = arith.constant 0 : i32
    %c0_i32_0 = arith.constant 0 : i32
    return %arg0, %c0_i32 : i32, i32
  }
}

</mosaic_0001>

<bundles_post_ra>
// kernel: _lambda_.1
= control target key start
LH: loop header
LB: loop body
LE: loop exit
PB: predicated region body
PF: predicated region fallthrough
CT: control target
= control target key end

     0   :  { %v319_v0 = vmov 0.0   ;;  %vm320_vm0 = vmmov 0   ;;  %vm73_vm1 = vcmask 523264   ;;  %vm144_vm2 = vcmask 261120   ;;  %s403_s1 = inlined_call_operand.vmem [shape: bf16[64,32], index: 1, kind: input, shape index: {}]   ;;  %s404_s0 = inlined_call_operand.vmem [shape: bf16[16,64], index: 0, kind: input, shape index: {}]   ;;  %s405_s3 = inlined_call_operand.vmem [shape: bf16[32,16], index: 3, kind: input, shape index: {}]   ;;  %s406_s2 = inlined_call_operand.vmem [shape: f32[1,32], index: 2, kind: input, shape index: {}]   ;;  %s407_s5 = inlined_call_operand.vmem [shape: bf16[16,10], index: 5, kind: input, shape index: {}]   ;;  %s408_s4 = inlined_call_operand.vmem [shape: f32[1,16], index: 4, kind: input, shape index: {}]   ;;  %s409_s6 = inlined_call_operand.vmem [shape: f32[1,10], index: 6, kind: input, shape index: {}]   ;;  %s410_s7 = inlined_call_operand.vmem [shape: f32[16,10], index: 7, kind: output, shape index: {}]  }
   0x1   :  { %283 = vmatprep.subr.bf16.mxu0 %v319_v0  ;;  %v311_v1 = vld [vmem:[%s403_s1] sm:$0xff]   ;;  %291 = vmatprep.mubr.msk.bf16.mxu0 %vm320_vm0, %v319_v0  ;;  %v312_v2 = vld [vmem:[%s403_s1 + $0x8] sm:$0xff]   ;;  %v313_v3 = vld [vmem:[%s403_s1 + $0x10] sm:$0xff]   ;;  %vm207_vm3 = vcmask 130048   ;;  %vm252_vm4 = vcmask 80896  }
   0x2   :  { %295 = vmatprep.subr.bf16.mxu1 %v319_v0  ;;  %299 = vmatprep.mubr.msk.bf16.mxu1 %vm320_vm0, %v319_v0  ;;  %v314_v4 = vld [vmem:[%s403_s1 + $0x18] sm:$0xff]   ;;  %v315_v5 = vld [vmem:[%s404_s0] sm:$0xff]   ;;  %v317_v7 = vld [vmem:[%s405_s3 + $0x8] sm:$0xff]  }
   0x3   :  { %284 = vmatpush3.bf16.msra.mxu0 %v311_v1  ;;  %v316_v6 = vld [vmem:[%s405_s3] sm:$0xff]  }
   0x4   :  { %285 = vmatprep.subr.bf16.mxu0 %v319_v0  ;;  %296 = vmatpush3.bf16.msra.mxu1 %v316_v6  ;;  %v259_v8 = vld [vmem:[%s406_s2] ss:$0 sm:$0xff] }
   0x5   :  { %297 = vmatprep.subr.bf16.mxu1 %v319_v0  ;;  %v318_v18 = vld [vmem:[%s407_s5] sm:$0xff]  }
   0x6   :  { %v266_v19 = vld [vmem:[%s408_s4] ss:$0 sm:$0xff] }
   0x7   :  { %286 = vmatpush3.bf16.msra.mxu0 %v312_v2  ;;  %v270_v29 = vld [vmem:[%s409_s6] ss:$0 sm:$0xff] }
   0x8   :  { %287 = vmatprep.subr.bf16.mxu0 %v319_v0  ;;  %298 = vmatpush3.bf16.msra.mxu1 %v317_v7 }
   0x9   :  { %303 = vmatprep.subr.bf16.mxu1 %v319_v0 }
   0xb   :  { %288 = vmatpush3.bf16.msra.mxu0 %v313_v3 }
   0xc   :  { %289 = vmatprep.subr.bf16.mxu0 %v319_v0 }
   0xf   :  { %290 = vmatpush3.bf16.msra.mxu0 %v314_v4 }
  0x12   :  { %292 = vmatmul.mubr.msk.bf16.vlgmr.msra.gmra.mrb[0].mxu0 %vm73_vm1, %v315_v5 }
  0xe5   :  { %v111_v9 = vpop.f32.mrb[0].mxu0 }
  0xe6   :  { %v112_v10 = vadd.f32 %v259_v8, %v111_v9  ;;  %v293_v11 = vpop.f32.mrb[1].mxu0 }
  0xe7   :  { %v114_v12 = vpop.f32.mrb[2].mxu0 }
  0xe8   :  { %v115_v13 = vadd.f32 %v259_v8, %v114_v12  ;;  %v294_v14 = vpop.f32.mrb[3].mxu0  ;;  %v118_v15 = vmax.f32 %v112_v10, 0.0 }
  0xea   :  { %v119_v16 = vmax.f32 %v115_v13, 0.0 }
  0xec   :  { %v120_v17 = vpack.c.bf16 %v119_v16, %v118_v15 }
  0xee   :  { %300 = vmatmul.mubr.msk.bf16.vlgmr.msra.gmra.mrb[0].mxu1 %vm144_vm2, %v120_v17 }
  0xef   :  { %305 = vmatprep.mubr.msk.bf16.mxu1 %vm320_vm0, %v319_v0  ;;  %304 = vmatpush3.bf16.msra.mxu1 %v318_v18 }
 0x1c1   :  { %v182_v20 = vpop.f32.mrb[0].mxu1 }
 0x1c2   :  { %v183_v21 = vadd.f32 %v266_v19, %v182_v20  ;;  %v301_v22 = vpop.f32.mrb[1].mxu1 }
 0x1c3   :  { %v185_v23 = vpop.f32.mrb[2].mxu1 }
 0x1c4   :  { %v186_v24 = vadd.f32 %v266_v19, %v185_v23  ;;  %v302_v25 = vpop.f32.mrb[3].mxu1  ;;  %v189_v26 = vmax.f32 %v183_v21, 0.0 }
 0x1c6   :  { %v190_v27 = vmax.f32 %v186_v24, 0.0 }
 0x1c8   :  { %v191_v28 = vpack.c.bf16 %v190_v27, %v189_v26 }
 0x1ca   :  { %306 = vmatmul.mubr.msk.bf16.vlgmr.msra.gmra.mrb[4].mxu1 %vm207_vm3, %v191_v28 }
 0x29d   :  { %v245_v30 = vpop.f32.mrb[4].mxu1 }
 0x29e   :  { %v246_v31 = vadd.f32 %v270_v29, %v245_v30  ;;  %v307_v32 = vpop.f32.mrb[5].mxu1 }
 0x29f   :  { %v248_v33 = vpop.f32.mrb[6].mxu1 }
 0x2a0   :  { %253 = vst.msk [vmem:[%s410_s7] sm:$0xff] %vm252_vm4, %v246_v31  ;;  %v249_v34 = vadd.f32 %v270_v29, %v248_v33  ;;  %v308_v35 = vpop.f32.mrb[7].mxu1 }
 0x2a2   :  { %254 = vst.msk [vmem:[%s410_s7 + $0x8] sm:$0xff] %vm252_vm4, %v249_v34 }

</bundles_post_ra>
